<compile_context>
chip_gen: v6e
topology: v6e:2x2x1
jax: 0.10.0
libtpu: 0.0.40
codegen_flags: <defaults>
</compile_context>

<pallas_src>
import jax
import jax.numpy as jnp
from jax.experimental import pallas as pl
from jax.experimental.pallas import tpu as pltpu

_SUBLANE = 8
_LANE = 128
_VMEM_BUDGET = 18 * 1024 * 1024         # compute-tile budget (safe on all gens)
_TARGET_TILE_BYTES = 2 * 1024 * 1024    # per input DMA buffer
_VMEM_LIMIT_FLOOR = 16 * 1024 * 1024
_VMEM_LIMIT_CAP = 28 * 1024 * 1024      # well under v7x's 64 MiB/TC physical VMEM


def _round_down(x, m):
    return (x // m) * m


def _act_softmax_kernel(x_ref, o_ref):
    # f32 compute keeps bf16 inputs accurate; temporaries live only in VMEM/vregs.
    e = jnp.exp(x_ref[...].astype(jnp.float32))           # EUP transcendental
    s = jnp.sum(e, axis=1, keepdims=True)                 # XLU lane-axis reduce
    # exact reciprocal keeps the 1e-6 self-test tolerance (approx=True would
    # use the idle EUP slot but adds ~2^-12 relative error).
    o_ref[...] = (e * pl.reciprocal(s, approx=False)).astype(o_ref.dtype)
    # TODO(synk): module is intentionally unstabilized (matches the torch code);
    # subtract the row max before exp if real inputs can exceed ~88 in f32.


def act_softmax(x, *, block_rows=None, feature_block=None):
    B, D = x.shape
    itemsize = jnp.dtype(x.dtype).itemsize
    io_row = D * itemsize
    # pipelined per-row VMEM: 2x input + 2x output buffers + f32 exp & product temps
    per_row_vmem = 4 * io_row + 2 * D * 4

    single_pass = feature_block is None and per_row_vmem * _SUBLANE <= _VMEM_BUDGET
    if single_pass:
        if block_rows is not None:
            tb = max(_SUBLANE, _round_down(block_rows, _SUBLANE))
        else:
            tb = max(_SUBLANE,
                     _round_down(_TARGET_TILE_BYTES // max(io_row, 1), _SUBLANE))
            tb = min(tb, max(_SUBLANE,
                             _round_down(_VMEM_BUDGET // per_row_vmem, _SUBLANE)))
        if tb >= B:
            tb = B                      # full-extent block: always layout-legal
        footprint = tb * per_row_vmem
        vmem_limit = min(max(int(footprint * 1.5) + (2 << 20), _VMEM_LIMIT_FLOOR),
                         _VMEM_LIMIT_CAP)
        return pl.pallas_call(
            _act_softmax_kernel,
            out_shape=jax.ShapeDtypeStruct((B, D), x.dtype),
            grid=(pl.cdiv(B, tb),),
            in_specs=[pl.BlockSpec((tb, D), lambda i: (i, 0))],
            out_specs=pl.BlockSpec((tb, D), lambda i: (i, 0)),
            compiler_params=pltpu.CompilerParams(
                dimension_semantics=("parallel",),
                vmem_limit_bytes=vmem_limit),
            cost_estimate=pl.CostEstimate(
                flops=2 * B * D,
                transcendentals=B * D,
                bytes_accessed=2 * B * D * itemsize),
        )(x)

    # ---- fallback: feature-tiled two-pass path for very wide feature dims ----
    if feature_block is not None:
        td = max(_LANE, _round_down(feature_block, _LANE))
    else:
        td = max(_LANE,
                 _round_down((_VMEM_BUDGET // 16) // (4 * itemsize + 8), _LANE))
    per_row_fb = 4 * td * itemsize + 2 * td * 4 + 32
    if block_rows is not None:
        tb = max(_SUBLANE, _round_down(block_rows, _SUBLANE))
    else:
        tb = max(_SUBLANE, _round_down(_VMEM_BUDGET // per_row_fb, _SUBLANE))
    if tb >= B:
        tb = B
    nb, nd = pl.cdiv(B, tb), pl.cdiv(D, td)
    footprint = tb * per_row_fb
    vmem_limit = min(max(int(footprint * 1.5) + (2 << 20), _VMEM_LIMIT_FLOOR),
                     _VMEM_LIMIT_CAP)

    def rowsum_kernel(x_ref, s_ref):
        j = pl.program_id(1)

        @pl.when(j == 0)
        def _init():
            s_ref[...] = jnp.zeros_like(s_ref)

        e = jnp.exp(x_ref[...].astype(jnp.float32))
        # mask out-of-range lanes of the (possibly overhanging) last feature block
        lane = jax.lax.broadcasted_iota(jnp.int32, e.shape, 1) + j * td
        s_ref[...] += jnp.sum(jnp.where(lane < D, e, 0.0), axis=1, keepdims=True)

    sums = pl.pallas_call(
        rowsum_kernel,
        out_shape=jax.ShapeDtypeStruct((B, 1), jnp.float32),
        grid=(nb, nd),
        in_specs=[pl.BlockSpec((tb, td), lambda i, j: (i, j))],
        out_specs=pl.BlockSpec((tb, 1), lambda i, j: (i, 0)),
        compiler_params=pltpu.CompilerParams(
            dimension_semantics=("parallel", "arbitrary"),
            vmem_limit_bytes=vmem_limit),
    )(x)

    def normalize_kernel(x_ref, s_ref, o_ref):
        e = jnp.exp(x_ref[...].astype(jnp.float32))
        o_ref[...] = (e * pl.reciprocal(s_ref[...], approx=False)).astype(o_ref.dtype)

    return pl.pallas_call(
        normalize_kernel,
        out_shape=jax.ShapeDtypeStruct((B, D), x.dtype),
        grid=(nb, nd),
        in_specs=[pl.BlockSpec((tb, td), lambda i, j: (i, j)),
                  pl.BlockSpec((tb, 1), lambda i, j: (i, 0))],
        out_specs=pl.BlockSpec((tb, td), lambda i, j: (i, j)),
        compiler_params=pltpu.CompilerParams(
            dimension_semantics=("parallel", "parallel"),
            vmem_limit_bytes=vmem_limit),
    )(x, sums)


def _reference(x):
    e = jnp.exp(x.astype(jnp.float32))
    return (e / jnp.sum(e, axis=1, keepdims=True)).astype(x.dtype)


if __name__ == "__main__":
    key = jax.random.PRNGKey(0)

    # Shape consistent with the module's (batch, features) input.
    x = jax.random.normal(key, (4, 32), dtype=jnp.float32)
    out = jax.block_until_ready(act_softmax(x))
    assert out.shape == x.shape
    assert jnp.allclose(out, _reference(x), atol=1e-6, rtol=1e-6)

    # The literal example from the spec: x = [[1., 2., 3.]].
    x_spec = jnp.array([[1.0, 2.0, 3.0]], dtype=jnp.float32)
    out_spec = jax.block_until_ready(act_softmax(x_spec))
    assert out_spec.shape == x_spec.shape
    assert jnp.allclose(out_spec, _reference(x_spec), atol=1e-6, rtol=1e-6)

    # Exercise the cdiv batch-remainder path (overhanging last row block).
    x_edge = jax.random.normal(jax.random.PRNGKey(1), (20, 256), dtype=jnp.float32)
    out_edge = jax.block_until_ready(act_softmax(x_edge, block_rows=8))
    assert jnp.allclose(out_edge, _reference(x_edge), atol=1e-6, rtol=1e-6)

    # Exercise the feature-tiled two-pass fallback (forced small feature block).
    x_wide = jax.random.normal(jax.random.PRNGKey(2), (16, 300), dtype=jnp.float32)
    out_wide = jax.block_until_ready(act_softmax(x_wide, feature_block=128))
    assert jnp.allclose(out_wide, _reference(x_wide), atol=1e-6, rtol=1e-6)

    print("KERNEL_OK")
</pallas_src>

<mosaic_0001>
module attributes {stable_mosaic.version = 11 : i64} {
  func.func @_act_softmax_kernel(%arg0: i32, %arg1: memref<4x32xf32, #tpu.memory_space<vmem>>, %arg2: memref<4x32xf32, #tpu.memory_space<vmem>>) attributes {dimension_semantics = [#tpu.dimension_semantics<parallel>], iteration_bounds = array<i64: 1>, scalar_prefetch = 0 : i64, scratch_operands = 0 : i64, tpu.core_type = #tpu.core_type<tc>, window_params = [{transform_indices = @transform_0, window_bounds = array<i64: 4, 32>}, {transform_indices = @transform_1, window_bounds = array<i64: 4, 32>}]} {
    %c0 = arith.constant 0 : index
    %c0_0 = arith.constant 0 : index
    %0 = vector.load %arg1[%c0, %c0_0] : memref<4x32xf32, #tpu.memory_space<vmem>>, vector<4x32xf32>
    %1 = math.exp %0 : vector<4x32xf32>
    %cst = arith.constant dense<0.000000e+00> : vector<4xf32>
    %2 = vector.multi_reduction <add>, %1, %cst [1] : vector<4x32xf32> to vector<4xf32>
    %3 = vector.shape_cast %2 : vector<4xf32> to vector<4x1xf32>
    %4 = tpu.reciprocal %3 : vector<4x1xf32> -> vector<4x1xf32>
    %5 = vector.broadcast %4 : vector<4x1xf32> to vector<4x32xf32>
    %6 = arith.mulf %1, %5 : vector<4x32xf32>
    %c0_1 = arith.constant 0 : index
    %c0_2 = arith.constant 0 : index
    %7 = vector.load %arg2[%c0_1, %c0_2] : memref<4x32xf32, #tpu.memory_space<vmem>>, vector<4x32xf32>
    tpu.vector_store %arg2[%c0_1, %c0_2], %6 {strides = array<i32>} : memref<4x32xf32, #tpu.memory_space<vmem>>, vector<4x32xf32>,
    return
  }
  func.func @transform_0(%arg0: i32) -> (i32, i32) {
    %c0_i32 = arith.constant 0 : i32
    %c0_i32_0 = arith.constant 0 : i32
    return %arg0, %c0_i32 : i32, i32
  }
  func.func @transform_1(%arg0: i32) -> (i32, i32) {
    %c0_i32 = arith.constant 0 : i32
    %c0_i32_0 = arith.constant 0 : i32
    return %arg0, %c0_i32 : i32, i32
  }
}

</mosaic_0001>

<bundles_post_ra>
// kernel: tpu_custom_call.1
= control target key start
LH: loop header
LB: loop body
LE: loop exit
PB: predicated region body
PF: predicated region fallthrough
CT: control target
= control target key end

     0   :  { %6 = vsyncpa [#allocation3], 0  ;;  %s114_s0 = inlined_call_operand.hbm [shape: f32[4,32], index: 0, kind: input, shape index: {}]   ;;  %s115_s1 = inlined_call_operand.hbm [shape: f32[4,32], index: 1, kind: output, shape index: {}]  }
   0x1   :  { %7 = vsyncpa [#allocation4], 0  ;;  %s96_s6 = smov [#allocation2]  }
   0x2   :  { %s14_s7 = sshll.u32 %s96_s6, 4  ;;  %s15_s7 = int_to_ptr.vmem [resolvable:$true] %s14_s7 }
   0x3   :  { %s60_s8 = scalar_lea.vmem %s15_s7, 64  ;;  %p65_p1 = scmp.lt.s32.totalorder %s15_s7, %s15_s7 }
   0x4   :  { %p61_p0 = scmp.ne.s32.totalorder %s15_s7, %s60_s8  ;;  %p66_p2 = scmp.lt.s32.totalorder %s60_s8, %s60_s8 }
   0x6   :  { %p67_p3 = por %p66_p2, %p65_p1 }
   0x8   :  { %p68_p4 = pnand %p67_p3, %p61_p0 }
   0xa   :  { %71 = shalt.err (!%p68_p4)
}
   0xb   :  { %17 = dma.hbm_to_vmem [thread:$0]  %s114_s0, 64, %s15_s7, [#allocation3]  }
   0xc   :  { %92 = dma.done.wait [#allocation3], 64  }
   0xd   :  { %93 = vsyncadd [#allocation3], 4294967232  ;;  %v21_v0 = vld [vmem:[#allocation2] sm:$0xf]  ;;  %vm24_vm0 = vcmask 257024   ;;  %s97_s11 = smov [#allocation5]  }
   0xe   :  { %v22_v1 = vmul.f32 1.442695, %v21_v0  ;;  %s37_s12 = sshll.u32 %s97_s11, 4  ;;  %s38_s12 = int_to_ptr.vmem [resolvable:$true] %s37_s12 }
   0xf   :  { %s72_s13 = scalar_lea.vmem %s38_s12, 64  ;;  %p77_p6 = scmp.lt.s32.totalorder %s38_s12, %s38_s12 }
  0x10   :  { %48 = vpow2.f32 %v22_v1  ;;  %p73_p5 = scmp.ne.s32.totalorder %s38_s12, %s72_s13  ;;  %p78_p7 = scmp.lt.s32.totalorder %s72_s13, %s72_s13 }
  0x12   :  { %p79_p8 = por %p78_p7, %p77_p6 }
  0x14   :  { %p80_p9 = pnand %p79_p8, %p73_p5 }
  0x1d   :  { %v49_v2 = vpop.eup %48 }
  0x1e   :  { %v25_v3 = vsel %vm24_vm0, %v49_v2, 0.0 }
  0x1f   :  { %26 = vadd.xlane.f32.xlu0 %v25_v3 }
  0xa8   :  { %v27_v4 = vpop.xlane.xlu0 %26 }
  0xa9   :  { %50 = vrcp.f32 %v27_v4 }
  0xb6   :  { %v51_v5 = vpop.eup %50 }
  0xb7   :  { %v29_v6 = vmul.f32 %v51_v5, %v49_v2 }
  0xb9   :  { %30 = vst.msk [vmem:[#allocation5] sm:$0xf] %vm24_vm0, %v29_v6 }
  0xba   :  { %83 = shalt.err (!%p80_p9)
}
  0xbb   :  { %40 = dma.vmem_to_hbm [thread:$0]  %s38_s12, 64, %s115_s1, [#allocation4]  }
  0xbc   :  { %94 = dma.done.wait [#allocation4], 64  }
  0xbd   :  { %95 = vsyncadd [#allocation4], 4294967232 }
  0xbe   :  { %44 = vsyncpa [#allocation3], 1 }
  0xbf   :  { %45 = vsyncpa [#allocation4], 1 }

</bundles_post_ra>
